<compile_context>
chip_gen: v7x
topology: tpu7x:2x2x1
jax: 0.10.0
libtpu: 0.0.40
codegen_flags: <defaults>
</compile_context>

<pallas_src>
import functools

import jax
import jax.numpy as jnp
from jax import lax
from jax.experimental import pallas as pl
from jax.experimental.pallas import tpu as pltpu


def _dice_kernel(logits_ref, label_ref, out_ref, *, num_classes, ignore_index,
                 rows_total, tile_r, n_inner, mask_rows):
    ii = pl.program_id(2)

    @pl.when(ii == 0)
    def _init():
        out_ref[...] = jnp.zeros_like(out_ref)

    label = label_ref[...].astype(jnp.int32)                    # (R, L)
    logits = logits_ref[...].astype(jnp.float32)                 # (C, R, L)

    if mask_rows:
        # Global (unclamped) row index of every sublane row in this block.
        # One check covers both the ragged last tile and duplicated (clamped)
        # blocks from the outer split -- no wrapper-side padding needed.
        row0 = (pl.program_id(1) * n_inner + ii) * tile_r
        row_idx = row0 + lax.broadcasted_iota(jnp.int32, label.shape, 0)
        row_ok = row_idx < rows_total
        # Sanitize garbage rows BEFORE exp so Inf/NaN can't leak through.
        logits = jnp.where(row_ok[None], logits, 0.0)
        valid = jnp.logical_and(row_ok, label != ignore_index)
    else:
        valid = label != ignore_index
    validf = valid.astype(jnp.float32)

    # Per-pixel softmax over the leading class axis: C-1 dense vreg max/adds
    # (no sublane/XLU reduce), all temporaries are dense (R, L) tiles.
    m = jnp.max(logits, axis=0)                                  # (R, L)
    e = jnp.exp(logits - m[None])                                # (C, R, L)
    s = jnp.sum(e, axis=0)                                       # (R, L)
    inv = pl.reciprocal(s, approx=True)                          # EUP slot
    inv = inv * (2.0 - s * inv)                                  # Newton step

    # exp() at the labelled (foreground) class; ignored / out-of-range pixels
    # are gated out by validf (covers ignore_index < num_classes too).
    cls = lax.broadcasted_iota(jnp.int32, e.shape, 0)
    hit = jnp.logical_and(cls == label[None], cls >= 1)
    e_lab = jnp.sum(jnp.where(hit, e, 0.0), axis=0)              # (R, L)

    inter = validf * (e_lab * inv)                               # prob@label
    psum = validf * (1.0 - e[0] * inv)                           # 1 - prob[0]
    fg = jnp.logical_and(label >= 1, label < num_classes)
    lsum = validf * fg.astype(jnp.float32)

    # Sublane-reduce each partial to one lane-dense row and accumulate into
    # the small resident (3, L) block (no concatenate, no full-width RMW).
    out_ref[0:1, :] += jnp.sum(inter, axis=0, keepdims=True)
    out_ref[1:2, :] += jnp.sum(psum, axis=0, keepdims=True)
    out_ref[2:3, :] += jnp.sum(lsum, axis=0, keepdims=True)


def dice_loss(logits, label, num_classes, ignore_index=255, eps=1e-3):
    """logits: (B, C, H, W) float (any dtype); label: (B, H, W) int.

    Returns scalar dice loss (float32), matching the PyTorch DiceLoss.forward.
    """
    b, c, h, w = logits.shape
    assert c == num_classes, "logits channel dim must equal num_classes"
    n = h * w

    if label.dtype != jnp.int32:
        label = label.astype(jnp.int32)
    logit_bytes = jnp.dtype(logits.dtype).itemsize

    # Lane-dense view: free reshapes only (no pad, no transpose, no copy).
    if n % 128 == 0:
        lane = 128
        rows_total = n // 128
        logits_v = logits.reshape(b, c, rows_total, lane)
        label_v = label.reshape(b, rows_total, lane)
    else:
        lane = w                      # fall back to native NCHW (W on lanes)
        rows_total = h
        logits_v = logits
        label_v = label

    # Generation-aware VMEM budget (v7x: 64 MiB physical; v5e/v6e: 128 MiB).
    try:
        vmem_cap = int(pltpu.get_tpu_info().vmem_capacity_bytes)
    except Exception:  # pragma: no cover - conservative fallback
        vmem_cap = 64 * 1024 * 1024
    budget = min(28 << 20, max(12 << 20, vmem_cap // 3))

    # Honest per-row cost: double-buffered input blocks + in-kernel f32
    # temporaries (f32 logits, e, and ~8 single-slab (R, L) f32 temps).
    per_row = lane * (2 * (c * logit_bytes + 4) + (2 * c + 8) * 4)
    # Target ~2 MiB of logits per grid step to amortize ~0.35us/step overhead.
    target_rows = max(8, (2 << 20) // max(1, lane * c * logit_bytes))
    tile_r = min(target_rows, max(8, budget // per_row))
    tile_r = max(8, (tile_r // 8) * 8)
    if rows_total <= tile_r:
        tile_r = rows_total          # full-extent block is always layout-legal

    n_row_tiles = pl.cdiv(rows_total, tile_r)
    # Keep both v7x TensorCores busy even when B is 1 / odd.
    n_outer = 2 if (b % 2 == 1 and n_row_tiles >= 2) else 1
    n_inner = pl.cdiv(n_row_tiles, n_outer)
    mask_rows = (n_outer * n_inner * tile_r) > rows_total

    def _row_block(oi, ii):
        # Clamp so duplicated trailing steps of the outer split stay in
        # bounds; the kernel's unclamped row mask zeroes their contribution.
        return jnp.minimum(oi * n_inner + ii, n_row_tiles - 1)

    kernel = functools.partial(
        _dice_kernel, num_classes=int(num_classes),
        ignore_index=int(ignore_index), rows_total=int(rows_total),
        tile_r=int(tile_r), n_inner=int(n_inner), mask_rows=bool(mask_rows))

    cost = pl.CostEstimate(
        flops=int(b * n * (8 * c + 14)),
        transcendentals=int(b * n * c),
        bytes_accessed=int(b * n * (c * logit_bytes + 4)
                           + b * n_outer * 3 * lane * 4),
    )

    partials = pl.pallas_call(
        kernel,
        out_shape=jax.ShapeDtypeStruct((b, n_outer, 3, lane), jnp.float32),
        grid_spec=pltpu.PrefetchScalarGridSpec(
            num_scalar_prefetch=0,
            grid=(b, n_outer, n_inner),
            in_specs=[
                pl.BlockSpec((pl.Squeezed(), c, tile_r, lane),
                             lambda bi, oi, ii: (bi, 0, _row_block(oi, ii), 0)),
                pl.BlockSpec((pl.Squeezed(), tile_r, lane),
                             lambda bi, oi, ii: (bi, _row_block(oi, ii), 0)),
            ],
            out_specs=pl.BlockSpec((pl.Squeezed(), pl.Squeezed(), 3, lane),
                                   lambda bi, oi, ii: (bi, oi, 0, 0)),
        ),
        compiler_params=pltpu.CompilerParams(
            dimension_semantics=("parallel", "parallel", "arbitrary"),
            vmem_limit_bytes=int(min(vmem_cap // 2, budget + (16 << 20)))),
        cost_estimate=cost,
    )(logits_v, label_v)

    tot = jnp.sum(partials, axis=(0, 1, 3))                      # (3,)
    inter, psum, lsum = tot[0], tot[1], tot[2]
    return 1.0 - (2.0 * inter + eps) / (psum + lsum + eps)


def _dice_loss_ref(logits, label, num_classes, ignore_index=255, eps=1e-3):
    # pure-JAX reference mirroring the PyTorch code (for sanity check)
    c = logits.shape[1]
    lg = jnp.transpose(logits, (1, 0, 2, 3)).reshape(c, -1).astype(jnp.float32)
    lb = label.reshape(-1)
    valid = lb != ignore_index
    prob = jax.nn.softmax(lg, axis=0)
    onehot = jax.nn.one_hot(lb, num_classes, axis=0, dtype=jnp.float32)
    onehot = jnp.where(valid[None, :], onehot, 0.0)
    prob = jnp.where(valid[None, :], prob, 0.0)
    onehot = onehot[1:, :]
    prob = prob[1:, :]
    inter = jnp.sum(onehot * prob)
    return 1.0 - (2.0 * inter + eps) / (jnp.sum(prob) + jnp.sum(onehot) + eps)


if __name__ == "__main__":
    num_classes = 4
    ignore_index = 255
    eps = 1e-3
    B, C, H, W = 2, num_classes, 16, 16

    key = jax.random.PRNGKey(0)
    k1, k2, k3 = jax.random.split(key, 3)
    # native bf16 logits exercise the "stream in model dtype" path
    logits = jax.random.normal(k1, (B, C, H, W),
                               dtype=jnp.float32).astype(jnp.bfloat16)
    label = jax.random.randint(k2, (B, H, W), 0, num_classes, dtype=jnp.int32)
    # sprinkle some ignore_index pixels
    ign = jax.random.bernoulli(k3, 0.1, (B, H, W))
    label = jnp.where(ign, ignore_index, label)

    loss = dice_loss(logits, label, num_classes, ignore_index, eps)
    loss = jax.block_until_ready(loss)

    ref = _dice_loss_ref(logits, label, num_classes, ignore_index, eps)
    assert jnp.allclose(loss, ref, atol=1e-5, rtol=1e-5), (loss, ref)

    print("KERNEL_OK")
</pallas_src>

<mosaic_0001>
module attributes {stable_mosaic.version = 11 : i64} {
  func.func @_dice_kernel(%arg0: i32, %arg1: i32, %arg2: i32, %arg3: memref<1x4x2x128xbf16, #tpu.memory_space<vmem>>, %arg4: memref<1x2x128xi32, #tpu.memory_space<vmem>>, %arg5: memref<1x1x3x128xf32, #tpu.memory_space<vmem>>) attributes {dimension_semantics = [#tpu.dimension_semantics<parallel>, #tpu.dimension_semantics<parallel>, #tpu.dimension_semantics<arbitrary>], iteration_bounds = array<i64: 2, 1, 1>, scalar_prefetch = 0 : i64, scratch_operands = 0 : i64, tpu.core_type = #tpu.core_type<tc>, window_params = [{transform_indices = @transform_0, window_bounds = array<i64: 1, 4, 2, 128>}, {transform_indices = @transform_1, window_bounds = array<i64: 1, 2, 128>}, {transform_indices = @transform_2, window_bounds = array<i64: 1, 1, 3, 128>}]} {
    %c0_i32 = arith.constant 0 : i32
    %0 = arith.cmpi eq, %arg2, %c0_i32 : i32
    %1 = arith.extui %0 : i1 to i32
    %c0_i32_0 = arith.constant 0 : i32
    %2 = arith.cmpi ne, %1, %c0_i32_0 : i32
    scf.if %2 {
      %cst_38 = arith.constant 0.000000e+00 : f32
      %73 = vector.broadcast %cst_38 : f32 to vector<3x128xf32>
      %c0_39 = arith.constant 0 : index
      %c0_40 = arith.constant 0 : index
      %c0_41 = arith.constant 0 : index
      %c0_42 = arith.constant 0 : index
      %74 = vector.load %arg5[%c0_39, %c0_40, %c0_41, %c0_42] : memref<1x1x3x128xf32, #tpu.memory_space<vmem>>, vector<1x1x3x128xf32>
      %75 = vector.shape_cast %74 : vector<1x1x3x128xf32> to vector<3x128xf32>
      %76 = vector.shape_cast %73 : vector<3x128xf32> to vector<1x1x3x128xf32>
      tpu.vector_store %arg5[%c0_39, %c0_40, %c0_41, %c0_42], %76 {strides = array<i32>} : memref<1x1x3x128xf32, #tpu.memory_space<vmem>>, vector<1x1x3x128xf32>,
    } else {
    }
    %c0 = arith.constant 0 : index
    %c0_1 = arith.constant 0 : index
    %c0_2 = arith.constant 0 : index
    %3 = vector.load %arg4[%c0, %c0_1, %c0_2] : memref<1x2x128xi32, #tpu.memory_space<vmem>>, vector<1x2x128xi32>
    %4 = vector.shape_cast %3 : vector<1x2x128xi32> to vector<2x128xi32>
    %c0_3 = arith.constant 0 : index
    %c0_4 = arith.constant 0 : index
    %c0_5 = arith.constant 0 : index
    %c0_6 = arith.constant 0 : index
    %5 = vector.load %arg3[%c0_3, %c0_4, %c0_5, %c0_6] : memref<1x4x2x128xbf16, #tpu.memory_space<vmem>>, vector<1x4x2x128xbf16>
    %6 = vector.shape_cast %5 : vector<1x4x2x128xbf16> to vector<4x2x128xbf16>
    %7 = arith.extf %6 : vector<4x2x128xbf16> to vector<4x2x128xf32>
    %c255_i32 = arith.constant 255 : i32
    %8 = vector.broadcast %c255_i32 : i32 to vector<2x128xi32>
    %9 = arith.cmpi ne, %4, %8 : vector<2x128xi32>
    %10 = arith.extui %9 : vector<2x128xi1> to vector<2x128xi32>
    %11 = arith.sitofp %10 : vector<2x128xi32> to vector<2x128xf32>
    %cst = arith.constant dense<0xFF800000> : vector<2x128xf32>
    %12 = vector.multi_reduction <maximumf>, %7, %cst [0] : vector<4x2x128xf32> to vector<2x128xf32>
    %13 = vector.shape_cast %12 : vector<2x128xf32> to vector<1x2x128xf32>
    %14 = vector.broadcast %13 : vector<1x2x128xf32> to vector<4x2x128xf32>
    %15 = arith.subf %7, %14 : vector<4x2x128xf32>
    %16 = math.exp %15 : vector<4x2x128xf32>
    %cst_7 = arith.constant dense<0.000000e+00> : vector<2x128xf32>
    %17 = vector.multi_reduction <add>, %16, %cst_7 [0] : vector<4x2x128xf32> to vector<2x128xf32>
    %18 = tpu.reciprocal %17 {approx = true} : vector<2x128xf32> -> vector<2x128xf32>
    %19 = arith.mulf %17, %18 : vector<2x128xf32>
    %cst_8 = arith.constant 2.000000e+00 : f32
    %20 = vector.broadcast %cst_8 : f32 to vector<2x128xf32>
    %21 = arith.subf %20, %19 : vector<2x128xf32>
    %22 = arith.mulf %18, %21 : vector<2x128xf32>
    %23 = tpu.iota {dimensions = array<i32: 0>} : vector<4x2x128xi32>
    %24 = vector.shape_cast %4 : vector<2x128xi32> to vector<1x2x128xi32>
    %25 = vector.broadcast %24 : vector<1x2x128xi32> to vector<4x2x128xi32>
    %26 = arith.cmpi eq, %23, %25 : vector<4x2x128xi32>
    %c1_i32 = arith.constant 1 : i32
    %27 = vector.broadcast %c1_i32 : i32 to vector<4x2x128xi32>
    %28 = arith.cmpi sge, %23, %27 : vector<4x2x128xi32>
    %29 = arith.andi %26, %28 : vector<4x2x128xi1>
    %cst_9 = arith.constant 0.000000e+00 : f32
    %30 = vector.broadcast %cst_9 : f32 to vector<4x2x128xf32>
    %31 = arith.select %29, %16, %30 : vector<4x2x128xi1>, vector<4x2x128xf32>
    %cst_10 = arith.constant dense<0.000000e+00> : vector<2x128xf32>
    %32 = vector.multi_reduction <add>, %31, %cst_10 [0] : vector<4x2x128xf32> to vector<2x128xf32>
    %33 = arith.mulf %32, %22 : vector<2x128xf32>
    %34 = arith.mulf %11, %33 : vector<2x128xf32>
    %35 = vector.extract_strided_slice %16 {offsets = [0, 0, 0], sizes = [1, 2, 128], strides = [1, 1, 1]} : vector<4x2x128xf32> to vector<1x2x128xf32>
    %36 = vector.shape_cast %35 : vector<1x2x128xf32> to vector<2x128xf32>
    %37 = arith.mulf %36, %22 : vector<2x128xf32>
    %cst_11 = arith.constant 1.000000e+00 : f32
    %38 = vector.broadcast %cst_11 : f32 to vector<2x128xf32>
    %39 = arith.subf %38, %37 : vector<2x128xf32>
    %40 = arith.mulf %11, %39 : vector<2x128xf32>
    %c1_i32_12 = arith.constant 1 : i32
    %41 = vector.broadcast %c1_i32_12 : i32 to vector<2x128xi32>
    %42 = arith.cmpi sge, %4, %41 : vector<2x128xi32>
    %c4_i32 = arith.constant 4 : i32
    %43 = vector.broadcast %c4_i32 : i32 to vector<2x128xi32>
    %44 = arith.cmpi slt, %4, %43 : vector<2x128xi32>
    %45 = arith.andi %42, %44 : vector<2x128xi1>
    %46 = arith.extui %45 : vector<2x128xi1> to vector<2x128xi32>
    %47 = arith.sitofp %46 : vector<2x128xi32> to vector<2x128xf32>
    %48 = arith.mulf %11, %47 : vector<2x128xf32>
    %c0_13 = arith.constant 0 : index
    %c0_14 = arith.constant 0 : index
    %c0_15 = arith.constant 0 : index
    %c0_16 = arith.constant 0 : index
    %49 = vector.load %arg5[%c0_13, %c0_14, %c0_15, %c0_16] : memref<1x1x3x128xf32, #tpu.memory_space<vmem>>, vector<1x1x1x128xf32>
    %50 = vector.shape_cast %49 : vector<1x1x1x128xf32> to vector<1x128xf32>
    %cst_17 = arith.constant dense<0.000000e+00> : vector<128xf32>
    %51 = vector.multi_reduction <add>, %34, %cst_17 [0] : vector<2x128xf32> to vector<128xf32>
    %52 = vector.shape_cast %51 : vector<128xf32> to vector<1x128xf32>
    %53 = arith.addf %50, %52 : vector<1x128xf32>
    %c0_18 = arith.constant 0 : index
    %c0_19 = arith.constant 0 : index
    %c0_20 = arith.constant 0 : index
    %c0_21 = arith.constant 0 : index
    %54 = vector.load %arg5[%c0_18, %c0_19, %c0_20, %c0_21] : memref<1x1x3x128xf32, #tpu.memory_space<vmem>>, vector<1x1x1x128xf32>
    %55 = vector.shape_cast %54 : vector<1x1x1x128xf32> to vector<1x128xf32>
    %56 = vector.shape_cast %53 : vector<1x128xf32> to vector<1x1x1x128xf32>
    tpu.vector_store %arg5[%c0_18, %c0_19, %c0_20, %c0_21], %56 {strides = array<i32>} : memref<1x1x3x128xf32, #tpu.memory_space<vmem>>, vector<1x1x1x128xf32>,
    %c0_22 = arith.constant 0 : index
    %c0_23 = arith.constant 0 : index
    %c1 = arith.constant 1 : index
    %c0_24 = arith.constant 0 : index
    %57 = vector.load %arg5[%c0_22, %c0_23, %c1, %c0_24] : memref<1x1x3x128xf32, #tpu.memory_space<vmem>>, vector<1x1x1x128xf32>
    %58 = vector.shape_cast %57 : vector<1x1x1x128xf32> to vector<1x128xf32>
    %cst_25 = arith.constant dense<0.000000e+00> : vector<128xf32>
    %59 = vector.multi_reduction <add>, %40, %cst_25 [0] : vector<2x128xf32> to vector<128xf32>
    %60 = vector.shape_cast %59 : vector<128xf32> to vector<1x128xf32>
    %61 = arith.addf %58, %60 : vector<1x128xf32>
    %c0_26 = arith.constant 0 : index
    %c0_27 = arith.constant 0 : index
    %c1_28 = arith.constant 1 : index
    %c0_29 = arith.constant 0 : index
    %62 = vector.load %arg5[%c0_26, %c0_27, %c1_28, %c0_29] : memref<1x1x3x128xf32, #tpu.memory_space<vmem>>, vector<1x1x1x128xf32>
    %63 = vector.shape_cast %62 : vector<1x1x1x128xf32> to vector<1x128xf32>
    %64 = vector.shape_cast %61 : vector<1x128xf32> to vector<1x1x1x128xf32>
    tpu.vector_store %arg5[%c0_26, %c0_27, %c1_28, %c0_29], %64 {strides = array<i32>} : memref<1x1x3x128xf32, #tpu.memory_space<vmem>>, vector<1x1x1x128xf32>,
    %c0_30 = arith.constant 0 : index
    %c0_31 = arith.constant 0 : index
    %c2 = arith.constant 2 : index
    %c0_32 = arith.constant 0 : index
    %65 = vector.load %arg5[%c0_30, %c0_31, %c2, %c0_32] : memref<1x1x3x128xf32, #tpu.memory_space<vmem>>, vector<1x1x1x128xf32>
    %66 = vector.shape_cast %65 : vector<1x1x1x128xf32> to vector<1x128xf32>
    %cst_33 = arith.constant dense<0.000000e+00> : vector<128xf32>
    %67 = vector.multi_reduction <add>, %48, %cst_33 [0] : vector<2x128xf32> to vector<128xf32>
    %68 = vector.shape_cast %67 : vector<128xf32> to vector<1x128xf32>
    %69 = arith.addf %66, %68 : vector<1x128xf32>
    %c0_34 = arith.constant 0 : index
    %c0_35 = arith.constant 0 : index
    %c2_36 = arith.constant 2 : index
    %c0_37 = arith.constant 0 : index
    %70 = vector.load %arg5[%c0_34, %c0_35, %c2_36, %c0_37] : memref<1x1x3x128xf32, #tpu.memory_space<vmem>>, vector<1x1x1x128xf32>
    %71 = vector.shape_cast %70 : vector<1x1x1x128xf32> to vector<1x128xf32>
    %72 = vector.shape_cast %69 : vector<1x128xf32> to vector<1x1x1x128xf32>
    tpu.vector_store %arg5[%c0_34, %c0_35, %c2_36, %c0_37], %72 {strides = array<i32>} : memref<1x1x3x128xf32, #tpu.memory_space<vmem>>, vector<1x1x1x128xf32>,
    return
  }
  func.func @transform_0(%arg0: i32, %arg1: i32, %arg2: i32) -> (i32, i32, i32, i32) {
    %c1_i32 = arith.constant 1 : i32
    %0 = arith.muli %arg1, %c1_i32 : i32
    %1 = arith.addi %0, %arg2 : i32
    %c0_i32 = arith.constant 0 : i32
    %2 = arith.minsi %1, %c0_i32 : i32
    %c0_i32_0 = arith.constant 0 : i32
    %c0_i32_1 = arith.constant 0 : i32
    %c0_i32_2 = arith.constant 0 : i32
    return %arg0, %c0_i32_0, %2, %c0_i32_1 : i32, i32, i32, i32
  }
  func.func @transform_1(%arg0: i32, %arg1: i32, %arg2: i32) -> (i32, i32, i32) {
    %c1_i32 = arith.constant 1 : i32
    %0 = arith.muli %arg1, %c1_i32 : i32
    %1 = arith.addi %0, %arg2 : i32
    %c0_i32 = arith.constant 0 : i32
    %2 = arith.minsi %1, %c0_i32 : i32
    %c0_i32_0 = arith.constant 0 : i32
    %c0_i32_1 = arith.constant 0 : i32
    return %arg0, %2, %c0_i32_0 : i32, i32, i32
  }
  func.func @transform_2(%arg0: i32, %arg1: i32, %arg2: i32) -> (i32, i32, i32, i32) {
    %c0_i32 = arith.constant 0 : i32
    %c0_i32_0 = arith.constant 0 : i32
    %c0_i32_1 = arith.constant 0 : i32
    return %arg0, %arg1, %c0_i32, %c0_i32_0 : i32, i32, i32, i32
  }
}

</mosaic_0001>

<bundles_post_ra>
// kernel: tpu_custom_call.1
= control target key start
LH: loop header
LB: loop body
LE: loop exit
PB: predicated region body
PF: predicated region fallthrough
CT: control target
= control target key end

     0   :  { %7 = vsyncpa [#allocation3], 0  ;;  %s903_s0 = inlined_call_operand.hbm [shape: bf16[2,4,2,128], index: 0, kind: input, shape index: {}]   ;;  %s904_s1 = inlined_call_operand.hbm [shape: s32[2,2,128], index: 1, kind: input, shape index: {}]   ;;  %s905_s2 = inlined_call_operand.vmem [shape: f32[2,1,3,128], index: 2, kind: output, shape index: {}]  }
   0x1   :  { %9 = vsyncpa [#allocation3 + $0x1], 0 }
   0x2   :  { %10 = vsyncpa [#allocation5], 0 }
   0x3   :  { %12 = vsyncpa [#allocation5 + $0x1], 0  ;;  %s703_s9 = smov 0   ;;  %s705_s10 = smov 0  }
   0x4   :  { %s707_s11 = smov 0   ;;  %s709_s12 = smov 0  }
   0x5   :  { %s711_s13 = smov 0   ;;  %s713_s14 = smov 0  }
   0x6 LB: > { %s476_s15 = sadd.s32 4294967295, %s681_s14   ;;  %s37_s16 = sadd.s32 1, %s677_s13  ;;  %s681_s14 = sphi %s713_s14, %s18_s14   ;;  %s677_s13 = sphi %s711_s13, %s917_s13   ;;  %s673_s12 = sphi %s709_s12, %s916_s12   ;;  %s669_s11 = sphi %s707_s11, %s915_s11   ;;  %s665_s10 = sphi %s705_s10, %s914_s10   ;;  %s661_s9 = sphi %s703_s9, %s913_s9  }
   0x7   : > { %p39_p0 = scmp.ge.s32.totalorder %s37_s16, 2  ;;  %s52_s17 = sadd.s32 1, %s669_s11 }
   0x8   : > { %p59_p1 = scmp.ne.s32.totalorder %s669_s11, %s665_s10  ;;  %p60_p2 = scmp.eq.s32.totalorder %s681_s14, 0 }
   0x9   : > { %s919_s16 = smov (%p39_p0, %s37_s16), 0  ;;  %p65_p4 = scmp.ne.s32.totalorder %s665_s10, %s661_s9 }
   0xa   : > { %p739_p3 = por %p60_p2, %p59_p1  ;;  %s47_s19 = ssub.s32 %s677_s13, %s919_s16 }
   0xb   : > { %p66_p5 = scmp.eq.s32.totalorder %s476_s15, 0  ;;  %p50_p6 = scmp.eq.s32.totalorder %s47_s19, 0 }
   0xc   : > { %p505_p8 = scmp.lt.s32.totalorder %s681_s14, 2  ;;  %s755_s22 = sand.u32 1, %s669_s11  }
   0xd   : > { %p746_p7 = por %p66_p5, %p65_p4  ;;  %s493_s23 = sshll.u32 %s677_s13, 6 }
   0xe   : > { %s752_s21 = scalar_select %p50_p6, %s669_s11, %s52_s17  }
   0xf   : > { %s908_s20 = scalar_select %p746_p7, 1, 0 }
  0x10   : > { %s480_s24 = sshll.u32 %s755_s22, 2  ;;  %s762_s27 = scalar_lea.hbm %s903_s0, %s493_s23 }
  0x11   : > { %s155_s28 = scalar_lea.vmem [#allocation2], %s480_s24  ;;  %p766_p9 = pnand %p505_p8, %p739_p3 }
  0x12   : > { %s166_s29 = sshll.u32 %s155_s28, 4  ;;  %s152_s3 = scalar_lea.sflag [#allocation3], %s755_s22  ;;  %s770_s29 = int_to_ptr.vmem [resolvable:$true] %s166_s29 }
  0x13   : > { %s567_s4 = scalar_lea.hbm %s762_s27, 64  ;;  %p569_p11 = pneg %p766_p9 }
  0x14   : > { %p568_p10 = scmp.ne.s32.totalorder %s762_s27, %s567_s4  ;;  %s572_s7 = scalar_lea.hbm %s903_s0, 128 }
  0x15   : > { %p573_p0 = scmp.lt.u32.totalorder %s762_s27, %s903_s0  ;;  %p574_p1 = scmp.lt.u32.totalorder %s572_s7, %s567_s4 }
  0x16   : > { %p570_p12 = pnand %p569_p11, %p568_p10  ;;  %p576_p3 = scmp.lt.u32.totalorder %s567_s4, %s762_s27 }
  0x17   : > { %p575_p2 = por %p574_p1, %p573_p0 }
  0x18   : > { %p571_p13 = pneg %p570_p12 }
  0x19   : > { %p577_p4 = por %p576_p3, %p575_p2 }
  0x1b   : > { %p578_p5 = pnand %p577_p4, %p571_p13 }
  0x1d   : > { %581 = shalt.err (!%p578_p5)
}
  0x1e   : > { %s582_s15 = scalar_lea.vmem %s770_s29, 64  ;;  %s683_s17 = smov [#allocation2]  }
  0x1f   : > { %p583_p6 = scmp.ne.s32.totalorder %s770_s29, %s582_s15  ;;  %s587_s18 = sshll.u32 %s683_s17, 4  ;;  %s588_s18 = int_to_ptr.vmem [resolvable:$false] %s587_s18 }
  0x20   : > { %s589_s19 = scalar_lea.vmem %s588_s18, 128  ;;  %p590_p12 = scmp.lt.s32.totalorder %s770_s29, %s588_s18 }
  0x21   : > { %p585_p8 = pnand %p583_p6, %p569_p11  ;;  %p591_p0 = scmp.lt.s32.totalorder %s589_s19, %s582_s15 }
  0x23   : > { %p586_p10 = pneg %p585_p8  ;;  %p592_p1 = por %p591_p0, %p590_p12 }
  0x25   : > { %p593_p2 = pnand %p592_p1, %p586_p10 }
  0x27   : > { %596 = shalt.err (!%p593_p2)
}
  0x28   : > { %s684_s23 = smov 16   ;;  %s685_s24 = smov 1  }
  0x29   : > { %501 = dma.hbm_to_vmem [thread:$0]  (!%p766_p9), %s762_s27, 64, %s770_s29, %s152_s3, %s684_s23, %s684_s23, %s685_s24  }
  0x2a   : > { %p485_p13 = scmp.ge.s32.totalorder %s681_s14, 1  ;;  %p196_p3 = scmp.lt.s32.totalorder %s681_s14, 3 }
  0x2b   : > { %s483_s25 = sshll.u32 %s755_s22, 1  ;;  %s484_s28 = sshll.u32 %s677_s13, 5 }
  0x2c   : > { %p803_p4 = pnand %p485_p13, %p196_p3  ;;  %s180_s4 = scalar_lea.vmem [#allocation4], %s483_s25 }
  0x2d   : > { %s191_s5 = sshll.u32 %s180_s4, 4  ;;  %s811_s8 = scalar_lea.hbm %s904_s1, %s484_s28  ;;  %s192_s5 = int_to_ptr.vmem [resolvable:$true] %s191_s5 }
  0x2e   : > { %s910_s26 = scalar_select %p803_p4, 1, 0 }
  0x2f   : > { %s177_s27 = scalar_lea.sflag [#allocation5], %s755_s22  ;;  %s597_s29 = scalar_lea.hbm %s811_s8, 32 }
  0x30   : > { %p598_p5 = scmp.ne.s32.totalorder %s811_s8, %s597_s29  ;;  %s602_s15 = scalar_lea.hbm %s904_s1, 64 }
  0x31   : > { %p603_p10 = scmp.lt.u32.totalorder %s811_s8, %s904_s1  ;;  %p604_p12 = scmp.lt.u32.totalorder %s602_s15, %s597_s29 }
  0x32   : > { %p600_p6 = pnand %p598_p5, %p569_p11  ;;  %p606_p1 = scmp.lt.u32.totalorder %s597_s29, %s811_s8 }
  0x33   : > { %p605_p0 = por %p604_p12, %p603_p10 }
  0x34   : > { %p601_p8 = pneg %p600_p6 }
  0x35   : > { %p607_p2 = por %p606_p1, %p605_p0 }
  0x37   : > { %p608_p13 = pnand %p607_p2, %p601_p8 }
  0x39   : > { %611 = shalt.err (!%p608_p13)
}
  0x3a   : > { %s612_s22 = scalar_lea.vmem %s192_s5, 32  ;;  %s686_s19 = smov [#allocation4]  }
  0x3b   : > { %p613_p3 = scmp.ne.s32.totalorder %s192_s5, %s612_s22  ;;  %s617_s23 = sshll.u32 %s686_s19, 4  ;;  %s618_s23 = int_to_ptr.vmem [resolvable:$false] %s617_s23 }
  0x3c   : > { %s619_s24 = scalar_lea.vmem %s618_s23, 64  ;;  %p620_p7 = scmp.lt.s32.totalorder %s192_s5, %s618_s23 }
  0x3d   : > { %p615_p5 = pnand %p613_p3, %p569_p11  ;;  %p621_p4 = scmp.lt.s32.totalorder %s619_s24, %s612_s22 }
  0x3f   : > { %p616_p6 = pneg %p615_p5  ;;  %p622_p10 = por %p621_p4, %p620_p7 }
  0x41   : > { %p623_p12 = pnand %p622_p10, %p616_p6 }
  0x43   : > { %626 = shalt.err (!%p623_p12)
}
  0x44   : > { %504 = dma.hbm_to_vmem [thread:$0]  (!%p766_p9), %s811_s8, 32, %s192_s5, %s177_s27  }
  0x45   : > { %p911_p8 = scmp.ne.s32.totalorder %s910_s26, 0 }
  0x46   : > { %s202_s25 = sand.u32 (!%p911_p8), 1, %s665_s10   ;;  %p912_p11 = scmp.ne.s32.totalorder (!%p911_p8), %s908_s20, 0 }
  0x47   : > { %200 = sbr.rel (%p911_p8) target bundleno = 154 (0x9a), region = 28  ;;  %s486_s28 = sshll.u32 (!%p911_p8), %s202_s25, 2 }
  0x48   : > { %s203_s4 = scalar_lea.sflag (!%p911_p8), [#allocation3], %s202_s25  ;;  %s206_s6 = scalar_lea.vmem (!%p911_p8), [#allocation2], %s486_s28 }
  0x4e   : > { %652 = dma.done.wait (%p912_p11), %s203_s4, 64  }
  0x4f   : > { %654 = vsyncadd (%p912_p11), %s203_s4, 4294967232  ;;  %s487_s7 = sshll.u32 %s202_s25, 1  ;;  %s212_s29 = scalar_lea.sflag [#allocation5], %s202_s25 }
  0x50   : > { %s215_s30 = scalar_lea.vmem [#allocation4], %s487_s7 }
  0x51   : > { %656 = dma.done.wait (%p912_p11), %s212_s29, 32  }
  0x52   : > { %658 = vsyncadd (%p912_p11), %s212_s29, 4294967264  ;;  %p249_p7 = scmp.lt.s32.totalorder %s673_s12, 1  ;;  %v687_v0 = vmov 0.0   ;;  %vm273_vm0 = vcmask 1041408   ;;  %v852_v1 = vld [vmem:[%s215_s30] sm:$0x3] }
  0x53   : > { %v262_v2 = vld [vmem:[%s206_s6] sm:$0x1]  ;;  %v263_v3 = vld [vmem:[%s206_s6 + $0x1] sm:$0x1]  ;;  %v264_v4 = vld [vmem:[%s206_s6 + $0x2] sm:$0x1] }
  0x54   : > { %s921_s12 = smov (!%p249_p7, %s673_s12), 1  ;;  %v265_v5 = vld [vmem:[%s206_s6 + $0x3] sm:$0x1]  ;;  %v266_v6 = vunpack.c.l.bf16 %v262_v2  ;;  %v267_v7 = vunpack.c.l.bf16 %v263_v3  ;;  %vm270_vm1 = vcmp.ne.s32.totalorder %v852_v1, 255  ;;  %v268_v8 = vunpack.c.l.bf16 %v264_v4 }
  0x55   : > { %s488_s26 = sshll.u32 %s921_s12, 2  ;;  %v269_v9 = vunpack.c.l.bf16 %v265_v5  ;;  %v855_v10 = vsel %vm270_vm1, 1.0, %v687_v0  ;;  %vm328_vm2 = vcmp.ge.s32.totalorder %v852_v1, 1  ;;  %vm329_vm3 = vcmp.lt.s32.totalorder %v852_v1, 4 }
  0x56   : > { %s849_s27 = scalar_lea.vmem %s905_s2, %s488_s26  ;;  %v274_v11 = vsel %vm273_vm0, %v266_v6, -inf  ;;  %v275_v12 = vsel %vm273_vm0, %v267_v7, -inf  ;;  %v276_v13 = vsel %vm273_vm0, %v268_v8, -inf  ;;  %vm330_vm4 = vmand %vm328_vm2, %vm329_vm3  ;;  %vm305_vm5 = vcmp.eq.s32.totalorder %v852_v1, 1 }
  0x57   : > { %260 = vst [vmem:[%s849_s27] sm:$0x7] %v687_v0  ;;  %v277_v14 = vsel %vm273_vm0, %v269_v9, -inf  ;;  %v278_v15 = vmax.f32 %v274_v11, %v275_v12  ;;  %v490_v17 = vsel %vm330_vm4, 1.0, %v687_v0  ;;  %vm306_vm6 = vcmp.eq.s32.totalorder %v852_v1, 2 }
  0x58   : > { %v279_v16 = vmax.f32 %v276_v13, %v277_v14  ;;  %v333_v19 = vmul.f32 %v490_v17, %v855_v10  ;;  %vm307_vm7 = vcmp.eq.s32.totalorder %v852_v1, 3 }
  0x5a   : > { %v280_v18 = vmax.f32 %v278_v15, %v279_v16  ;;  %v355_v24 = vsel %vm273_vm0, %v333_v19, 0.0 }
  0x5b   : > { %v356_v29 = vrot.slane %v355_v24, 4 }
  0x5c   : > { %v281_v20 = vsub.f32 %v266_v6, %v280_v18  ;;  %v282_v21 = vsub.f32 %v267_v7, %v280_v18  ;;  %v283_v22 = vsub.f32 %v268_v8, %v280_v18  ;;  %v284_v23 = vsub.f32 %v269_v9, %v280_v18 }
  0x5d   : > { %v357_v30 = vadd.f32 %v356_v29, %v355_v24 }
  0x5e   : > { %v285_v25 = vmul.f32 1.442695, %v281_v20  ;;  %v287_v26 = vmul.f32 1.442695, %v282_v21  ;;  %v289_v27 = vmul.f32 1.442695, %v283_v22 }
  0x5f   : > { %v291_v28 = vmul.f32 1.442695, %v284_v23  ;;  %v358_v31 = vrot.slane %v357_v30, 2  ;;  %v354_v34 = vld [vmem:[%s849_s27 + $0x2] sm:$0x1] }
  0x60   : > { %557 = vpow2.f32 %v285_v25  ;;  %v334_v13 = vld [vmem:[%s849_s27] sm:$0x1]  ;;  %v344_v16 = vld [vmem:[%s849_s27 + $0x1] sm:$0x1] }
  0x61   : > { %559 = vpow2.f32 %v287_v26  ;;  %v359_v32 = vadd.f32 %v358_v31, %v357_v30 }
  0x62   : > { %561 = vpow2.f32 %v289_v27 }
  0x63   : > { %563 = vpow2.f32 %v291_v28  ;;  %v360_v33 = vrot.slane %v359_v32, 1 }
  0x65   : > { %v361_v35 = vadd.f32 %v360_v33, %v359_v32 }
  0x67   : > { %v362_v39 = vadd.f32 %v361_v35, %v354_v34 }
  0x69   : > { %363 = vst [vmem:[%s849_s27 + $0x2] sm:$0x1] %v362_v39 }
  0x6a   : > { %v558_v36 = vpop.eup %557 }
  0x6b   : > { %v560_v37 = vpop.eup %559  ;;  %v293_v38 = vsel %vm273_vm0, %v558_v36, 0.0 }
  0x6c   : > { %v562_v40 = vpop.eup %561  ;;  %v294_v41 = vsel %vm273_vm0, %v560_v37, 0.0  ;;  %v313_v48 = vsel %vm305_vm5, %v560_v37, 0.0 }
  0x6d   : > { %v564_v42 = vpop.eup %563  ;;  %v295_v43 = vadd.f32 %v294_v41, %v293_v38  ;;  %v296_v44 = vsel %vm273_vm0, %v562_v40, 0.0  ;;  %v314_v49 = vsel %vm306_vm6, %v562_v40, 0.0  ;;  %v317_v50 = vsel %vm273_vm0, %v313_v48, 0.0 }
  0x6e   : > { %v298_v45 = vsel %vm273_vm0, %v564_v42, 0.0  ;;  %v319_v51 = vsel %vm273_vm0, %v314_v49, 0.0  ;;  %v315_v52 = vsel %vm307_vm7, %v564_v42, 0.0 }
  0x6f   : > { %v297_v46 = vadd.f32 %v296_v44, %v295_v43  ;;  %v320_v53 = vadd.f32 %v319_v51, %v317_v50  ;;  %v321_v55 = vsel %vm273_vm0, %v315_v52, 0.0 }
  0x71   : > { %v299_v47 = vadd.f32 %v298_v45, %v297_v46  ;;  %v322_v58 = vadd.f32 %v321_v55, %v320_v53 }
  0x73   : > { %565 = vrcp.f32 %v299_v47 }
  0x7d   : > { %v566_v54 = vpop.eup %565 }
  0x7e   : > { %v301_v56 = vmul.f32 %v566_v54, %v299_v47 }
  0x80   : > { %v302_v57 = vsub.f32 2.0, %v301_v56 }
  0x82   : > { %v303_v59 = vmul.f32 %v566_v54, %v302_v57 }
  0x84   : > { %v323_v60 = vmul.f32 %v322_v58, %v303_v59  ;;  %v325_v61 = vmul.f32 %v558_v36, %v303_v59 }
  0x86   : > { %v324_v62 = vmul.f32 %v855_v10, %v323_v60  ;;  %v326_v63 = vsub.f32 1.0, %v325_v61 }
  0x88   : > { %v327_v0 = vmul.f32 %v855_v10, %v326_v63  ;;  %v335_v1 = vsel %vm273_vm0, %v324_v62, 0.0 }
  0x89   : > { %v336_v2 = vrot.slane %v335_v1, 4 }
  0x8a   : > { %v345_v3 = vsel %vm273_vm0, %v327_v0, 0.0 }
  0x8b   : > { %v337_v4 = vadd.f32 %v336_v2, %v335_v1  ;;  %v346_v5 = vrot.slane %v345_v3, 4 }
  0x8d   : > { %v338_v6 = vrot.slane %v337_v4, 2  ;;  %v347_v7 = vadd.f32 %v346_v5, %v345_v3 }
  0x8f   : > { %v348_v8 = vrot.slane %v347_v7, 2  ;;  %v339_v9 = vadd.f32 %v338_v6, %v337_v4 }
  0x91   : > { %v340_v11 = vrot.slane %v339_v9, 1  ;;  %v349_v12 = vadd.f32 %v348_v8, %v347_v7 }
  0x93   : > { %v341_v14 = vadd.f32 %v340_v11, %v339_v9  ;;  %v350_v15 = vrot.slane %v349_v12, 1 }
  0x95   : > { %v342_v10 = vadd.f32 %v341_v14, %v334_v13  ;;  %v351_v17 = vadd.f32 %v350_v15, %v349_v12 }
  0x97   : > { %343 = vst [vmem:[%s849_s27] sm:$0x1] %v342_v10  ;;  %v352_v18 = vadd.f32 %v351_v17, %v344_v16 }
  0x99   : > { %353 = vst [vmem:[%s849_s27 + $0x1] sm:$0x1] %v352_v18 }
  0x9a PF: > { %s18_s14 = sadd.s32 1, %s681_s14   ;;  %s913_s9 = smov %s665_s10 }
  0x9b   : > { %p15_p9 = scmp.ge.s32.totalorder %s18_s14, 4   ;;  %s914_s10 = smov %s669_s11 }
  0x9c   : > { %s915_s11 = smov %s752_s21  ;;  %s916_s12 = smov %s677_s13 }
  0x9d   : > { %s917_s13 = smov %s919_s16  ;;  %17 = sbr.rel (!%p15_p9) target bundleno = 6 (0x6), region = 85 }
  0xa4   :  { %389 = vsyncpa [#allocation3], 1 }
  0xa5   :  { %391 = vsyncpa [#allocation3 + $0x1], 1 }
  0xa6   :  { %392 = vsyncpa [#allocation5], 1 }
  0xa7   :  { %394 = vsyncpa [#allocation5 + $0x1], 1 }

</bundles_post_ra>
